<compile_context>
chip_gen: v5e
topology: v5e:2x2
jax: 0.10.0
libtpu: 0.0.40
codegen_flags: <defaults>
</compile_context>

<pallas_src>
import functools
import math

import jax
import jax.numpy as jnp
from jax.experimental import pallas as pl
from jax.experimental.pallas import tpu as pltpu


# ---------------------------------------------------------------------------
# Generation-aware VMEM budget / tile targets.
# ---------------------------------------------------------------------------
def _vmem_capacity_bytes():
    cap = 128 * 1024 * 1024
    try:
        info = pltpu.get_tpu_info()
        cap = int(getattr(info, "vmem_capacity_bytes", cap))
    except Exception:
        pass
    return cap


_VMEM_CAP = _vmem_capacity_bytes()
_LARGE_VMEM = _VMEM_CAP >= 96 * 1024 * 1024           # v5e/v6e: 128 MiB; v7x: 64 MiB
_VMEM_LIMIT = int(min(_VMEM_CAP * 3 // 4, 100 * 1024 * 1024))


def _choose_tile(dim, target, align):
    """Divisor-based tile pick: aligned divisor <= target, else smallest aligned
    divisor > target, else the full dim (legal: full-dim blocks bypass (8,128))."""
    if dim <= target:
        return dim
    t = (target // align) * align
    while t >= align:
        if dim % t == 0:
            return t
        t -= align
    t = ((target // align) + 1) * align
    while t < dim:
        if dim % t == 0:
            return t
        t += align
    # TODO(synk): pad + masked remainder instead of a full-dim fallback.
    return dim


# ---------------------------------------------------------------------------
# Kernel 1: tiled dense projection  y = x @ W (+ b)
#   grid = (M/tm, Dout/tn, Din/tk), f32 accumulator in VMEM scratch.
#   x is cast to bf16 in-kernel (no wrapper-level cast pass over HBM).
# ---------------------------------------------------------------------------
def _linear_kernel(x_ref, w_ref, o_ref, acc_ref):
    @pl.when(pl.program_id(2) == 0)
    def _():
        acc_ref[...] = jnp.zeros_like(acc_ref)

    acc_ref[...] += jnp.dot(
        x_ref[...].astype(jnp.bfloat16), w_ref[...],
        preferred_element_type=jnp.float32)

    @pl.when(pl.program_id(2) == pl.num_programs(2) - 1)
    def _():
        o_ref[...] = acc_ref[...].astype(o_ref.dtype)


def _linear_bias_kernel(x_ref, w_ref, b_ref, o_ref, acc_ref):
    @pl.when(pl.program_id(2) == 0)
    def _():
        acc_ref[...] = jnp.zeros_like(acc_ref)

    acc_ref[...] += jnp.dot(
        x_ref[...].astype(jnp.bfloat16), w_ref[...],
        preferred_element_type=jnp.float32)

    @pl.when(pl.program_id(2) == pl.num_programs(2) - 1)
    def _():
        o_ref[...] = (acc_ref[...] + b_ref[...]).astype(o_ref.dtype)


def linear(x2d, w, b=None, *, out_dtype=jnp.float32,
           tm_target=None, tn_target=None, tk_target=None):
    """x2d: (M, Din) any float dtype, w: (Din, Dout) bf16, b: (1, Dout) f32 or None."""
    if tm_target is None:
        tm_target = 512 if _LARGE_VMEM else 256
    if tn_target is None:
        tn_target = 1024 if _LARGE_VMEM else 512
    if tk_target is None:
        tk_target = 1024 if _LARGE_VMEM else 512

    M, K = x2d.shape
    N = w.shape[1]
    tm = _choose_tile(M, tm_target, 8)
    tn = _choose_tile(N, tn_target, 128)
    tk = _choose_tile(K, tk_target, 128)
    grid = (M // tm, N // tn, K // tk)

    if w.dtype != jnp.bfloat16:
        w = w.astype(jnp.bfloat16)          # no-op for the bf16 param copies

    in_specs = [
        pl.BlockSpec((tm, tk), lambda i, j, kk: (i, kk)),
        pl.BlockSpec((tk, tn), lambda i, j, kk: (kk, j)),
    ]
    args = [x2d, w]
    kernel = _linear_kernel
    if b is not None:
        in_specs.append(pl.BlockSpec((1, tn), lambda i, j, kk: (0, j)))
        args.append(b)
        kernel = _linear_bias_kernel

    return pl.pallas_call(
        kernel,
        out_shape=jax.ShapeDtypeStruct((M, N), out_dtype),
        grid_spec=pltpu.PrefetchScalarGridSpec(
            num_scalar_prefetch=0,
            grid=grid,
            in_specs=in_specs,
            out_specs=pl.BlockSpec((tm, tn), lambda i, j, kk: (i, j)),
            scratch_shapes=[pltpu.VMEM((tm, tn), jnp.float32)],
        ),
        compiler_params=pltpu.CompilerParams(
            dimension_semantics=("parallel", "parallel", "arbitrary"),
            vmem_limit_bytes=_VMEM_LIMIT,
        ),
    )(*args)


# ---------------------------------------------------------------------------
# Kernel 2: flash-style scaled dot-product attention, heads packed in the lane dim.
#   q: (B, Nq, H*hd) lane-dense, k/v fed as (1, tk, hb*hd) column blocks (possibly
#   straight out of the fused KV buffer).  grid = (B, H/hb, Nq/tq, Nk/tk), the
#   Nk axis is "arbitrary"; m/l/acc per-head scratch in VMEM.
#   Q is pre-scaled by 1/sqrt(hd) (folded into W_q) -> no per-score multiply.
# ---------------------------------------------------------------------------
_TRANS_B_DIMS = (((1,), (1,)), ((), ()))   # contract last dims: (tq,hd)x(tk,hd)->(tq,tk)


def _flash_kernel(q_ref, k_ref, v_ref, o_ref, m_ref, l_ref, acc_ref, *, hb, hd):
    ki = pl.program_id(3)

    @pl.when(ki == 0)
    def _():
        m_ref[...] = jnp.full_like(m_ref, -jnp.inf)
        l_ref[...] = jnp.zeros_like(l_ref)
        acc_ref[...] = jnp.zeros_like(acc_ref)

    for h in range(hb):                                      # static unroll over heads
        q_h = q_ref[0, :, h * hd:(h + 1) * hd]               # (tq, hd) bf16, pre-scaled
        k_h = k_ref[0, :, h * hd:(h + 1) * hd]               # (tk, hd) bf16
        v_h = v_ref[0, :, h * hd:(h + 1) * hd]               # (tk, hd) bf16

        s = jax.lax.dot_general(q_h, k_h, _TRANS_B_DIMS,
                                preferred_element_type=jnp.float32)  # (tq, tk)

        m_prev = m_ref[h]                                    # (tq, 1)
        m_new = jnp.maximum(m_prev, jnp.max(s, axis=-1, keepdims=True))
        alpha = jnp.exp(m_prev - m_new)
        p = jnp.exp(s - m_new)                               # (tq, tk) f32

        l_ref[h] = alpha * l_ref[h] + jnp.sum(p, axis=-1, keepdims=True)
        acc_ref[h] = alpha * acc_ref[h] + jnp.dot(
            p.astype(v_h.dtype), v_h, preferred_element_type=jnp.float32)
        m_ref[h] = m_new

    @pl.when(ki == pl.num_programs(3) - 1)
    def _():
        # Lane-dense output slab: each head writes its hd columns of the (tq, hb*hd)
        # VMEM block; the HBM writeback DMA is then fully dense.
        for h in range(hb):
            inv_l = pl.reciprocal(l_ref[h], approx=True)     # (tq, 1)
            o_ref[0, :, h * hd:(h + 1) * hd] = (acc_ref[h] * inv_l).astype(o_ref.dtype)


def _pick_head_block(num_heads, head_dim, target=8):
    """Largest divisor hb of H with hb*hd a multiple of 128 (lane-dense KV blocks)."""
    for hb in range(min(num_heads, target), 0, -1):
        if num_heads % hb == 0 and (hb * head_dim) % 128 == 0:
            return hb, True
    return num_heads, False


def sdpa(q, k, v, *, num_heads, head_dim, hb, v_block_offset=0,
         tq_target=None, tk_target=256):
    """q: (B, Nq, H*hd) bf16; k/v: (B, Nk, C) bf16 where column block `h`
    (and `h + v_block_offset` for v) holds that head-group's features."""
    if tq_target is None:
        tq_target = 512 if _LARGE_VMEM else 256

    B, Nq, inner = q.shape
    Nk = k.shape[1]
    hd = head_dim
    hw = hb * hd                                          # lane width per block
    tq = _choose_tile(Nq, tq_target, 128)
    tk = _choose_tile(Nk, tk_target, 128)
    grid = (B, num_heads // hb, Nq // tq, Nk // tk)

    kernel = functools.partial(_flash_kernel, hb=hb, hd=hd)
    v_off = int(v_block_offset)

    return pl.pallas_call(
        kernel,
        out_shape=jax.ShapeDtypeStruct((B, Nq, inner), jnp.bfloat16),
        grid_spec=pltpu.PrefetchScalarGridSpec(
            num_scalar_prefetch=0,
            grid=grid,
            in_specs=[
                pl.BlockSpec((1, tq, hw), lambda b, h, qi, ki: (b, qi, h)),
                pl.BlockSpec((1, tk, hw), lambda b, h, qi, ki: (b, ki, h)),
                pl.BlockSpec((1, tk, hw), lambda b, h, qi, ki: (b, ki, h + v_off)),
            ],
            out_specs=pl.BlockSpec((1, tq, hw), lambda b, h, qi, ki: (b, qi, h)),
            scratch_shapes=[
                pltpu.VMEM((hb, tq, 1), jnp.float32),    # running max m
                pltpu.VMEM((hb, tq, 1), jnp.float32),    # running denom l
                pltpu.VMEM((hb, tq, hd), jnp.float32),   # output accumulator
            ],
        ),
        compiler_params=pltpu.CompilerParams(
            dimension_semantics=("parallel", "parallel", "parallel", "arbitrary"),
            vmem_limit_bytes=_VMEM_LIMIT,
        ),
    )(q, k, v)


# ---------------------------------------------------------------------------
# Module wrapper: only free reshapes in JAX; matmuls / attention in Pallas.
# ---------------------------------------------------------------------------
class AttentionParams:
    def __init__(self, key, dim, context_dim, num_heads=8, head_dim=64):
        self.num_heads = num_heads
        self.head_dim = head_dim
        inner = num_heads * head_dim
        k1, k2, k3, k4, k5 = jax.random.split(key, 5)

        def init(k, fan_in, fan_out):
            bound = 1.0 / math.sqrt(fan_in)
            return jax.random.uniform(k, (fan_in, fan_out), jnp.float32, -bound, bound)

        # f32 master weights (used by the pure-JAX reference).
        self.w_q = init(k1, dim, inner)            # no bias
        self.w_k = init(k2, context_dim, inner)    # no bias
        self.w_v = init(k3, context_dim, inner)    # no bias
        self.w_out = init(k4, inner, dim)
        bound = 1.0 / math.sqrt(inner)
        self.b_out = jax.random.uniform(k5, (1, dim), jnp.float32, -bound, bound)

        # bf16 compute copies: softmax scale folded into W_q (mathematically exact),
        # K/V fused column-wise so the context is projected in a single matmul.
        scale = 1.0 / math.sqrt(head_dim)
        self.wq_c = (self.w_q * scale).astype(jnp.bfloat16)
        self.wkv_c = jnp.concatenate([self.w_k, self.w_v], axis=1).astype(jnp.bfloat16)
        self.wout_c = self.w_out.astype(jnp.bfloat16)


def attention_forward(params: AttentionParams, x, context=None):
    """x: (B, Nq, dim), context: (B, Nk, context_dim) or None -> (B, Nq, dim)."""
    if context is None:
        context = x
    B, Nq, dim = x.shape
    Nk = context.shape[1]
    H, hd = params.num_heads, params.head_dim
    inner = H * hd

    x2d = x.reshape(B * Nq, dim)
    c2d = context.reshape(B * Nk, context.shape[2])

    # Q projection (pre-scaled by 1/sqrt(hd)) + fused K/V projection; bf16 outputs.
    q2d = linear(x2d, params.wq_c, out_dtype=jnp.bfloat16)     # (B*Nq, inner)
    kv2d = linear(c2d, params.wkv_c, out_dtype=jnp.bfloat16)   # (B*Nk, 2*inner)

    # Pure (free) reshapes only; head split/merge lives in the sdpa BlockSpecs.
    q3 = q2d.reshape(B, Nq, inner)
    kv3 = kv2d.reshape(B, Nk, 2 * inner)

    hb, dense_ok = _pick_head_block(H, hd)
    if dense_ok:
        # Feed K and V straight from the fused kv buffer via column-block index_maps.
        o3 = sdpa(q3, kv3, kv3, num_heads=H, head_dim=hd, hb=hb,
                  v_block_offset=H // hb)
    else:
        # hb*hd is not a multiple of 128: split KV with one slice pass and use
        # full-inner blocks (hb = H).
        # TODO(synk): pad head_dim so hb*hd % 128 == 0 and keep the fused path.
        k3 = kv3[:, :, :inner]
        v3 = kv3[:, :, inner:]
        o3 = sdpa(q3, k3, v3, num_heads=H, head_dim=hd, hb=H, v_block_offset=0)

    # Lane-dense (B, Nq, inner) attention output -> pure reshape into the out proj.
    o2d = o3.reshape(B * Nq, inner)
    out = linear(o2d, params.wout_c, params.b_out, out_dtype=jnp.float32)
    return out.reshape(B, Nq, dim)


# ---------------------------------------------------------------------------
# Pure-JAX reference for correctness checking (f32 throughout).
# ---------------------------------------------------------------------------
def attention_reference(params: AttentionParams, x, context=None):
    if context is None:
        context = x
    B, Nq, dim = x.shape
    Nk = context.shape[1]
    H, hd = params.num_heads, params.head_dim
    q = (x @ params.w_q).reshape(B, Nq, H, hd).transpose(0, 2, 1, 3)
    k = (context @ params.w_k).reshape(B, Nk, H, hd).transpose(0, 2, 1, 3)
    v = (context @ params.w_v).reshape(B, Nk, H, hd).transpose(0, 2, 1, 3)
    s = jnp.einsum("bhqd,bhkd->bhqk", q, k) / math.sqrt(hd)
    p = jax.nn.softmax(s, axis=-1)
    o = jnp.einsum("bhqk,bhkd->bhqd", p, v)
    o = o.transpose(0, 2, 1, 3).reshape(B, Nq, H * hd)
    return o @ params.w_out + params.b_out


if __name__ == "__main__":
    key = jax.random.PRNGKey(0)
    kp1, kp2, kx, kc = jax.random.split(key, 4)

    # Test 1: self-attention, fused lane-dense KV path (hb*hd == 128).
    B, N, dim = 2, 8, 32
    params = AttentionParams(kp1, dim=dim, context_dim=dim, num_heads=4, head_dim=32)
    x = jax.random.normal(kx, (B, N, dim), jnp.float32)

    out = jax.block_until_ready(attention_forward(params, x, context=None))
    ref = attention_reference(params, x, context=None)
    assert out.shape == (B, N, dim)
    # bf16 weights/activations + approx reciprocal -> relaxed tolerance vs f32 ref.
    assert jnp.allclose(out, ref, atol=5e-2, rtol=5e-2), float(jnp.max(jnp.abs(out - ref)))

    # Test 2: cross-attention with different context width/length; exercises the
    # split-KV fallback path (hb*hd == 64 is not a multiple of 128).
    ctx_dim, Nk = 48, 24
    params2 = AttentionParams(kp2, dim=dim, context_dim=ctx_dim, num_heads=4, head_dim=16)
    ctx = jax.random.normal(kc, (B, Nk, ctx_dim), jnp.float32)

    out2 = jax.block_until_ready(attention_forward(params2, x, context=ctx))
    ref2 = attention_reference(params2, x, context=ctx)
    assert out2.shape == (B, N, dim)
    assert jnp.allclose(out2, ref2, atol=5e-2, rtol=5e-2), float(jnp.max(jnp.abs(out2 - ref2)))

    print("KERNEL_OK")
</pallas_src>

<mosaic_0001>
module attributes {stable_mosaic.version = 11 : i64} {
  func.func @_linear_kernel(%arg0: i32, %arg1: i32, %arg2: i32, %arg3: memref<16x32xf32, #tpu.memory_space<vmem>>, %arg4: memref<32x128xbf16, #tpu.memory_space<vmem>>, %arg5: memref<16x128xbf16, #tpu.memory_space<vmem>>, %arg6: memref<16x128xf32, #tpu.memory_space<vmem>>) attributes {dimension_semantics = [#tpu.dimension_semantics<parallel>, #tpu.dimension_semantics<parallel>, #tpu.dimension_semantics<arbitrary>], iteration_bounds = array<i64: 1, 1, 1>, scalar_prefetch = 0 : i64, scratch_operands = 1 : i64, tpu.core_type = #tpu.core_type<tc>, window_params = [{transform_indices = @transform_0, window_bounds = array<i64: 16, 32>}, {transform_indices = @transform_1, window_bounds = array<i64: 32, 128>}, {transform_indices = @transform_2, window_bounds = array<i64: 16, 128>}]} {
    %c0_i32 = arith.constant 0 : i32
    %0 = arith.cmpi eq, %arg2, %c0_i32 : i32
    %1 = arith.extui %0 : i1 to i32
    %c0_i32_0 = arith.constant 0 : i32
    %2 = arith.cmpi ne, %1, %c0_i32_0 : i32
    scf.if %2 {
      %cst_10 = arith.constant 0.000000e+00 : f32
      %13 = vector.broadcast %cst_10 : f32 to vector<16x128xf32>
      %c0_11 = arith.constant 0 : index
      %c0_12 = arith.constant 0 : index
      %14 = vector.load %arg6[%c0_11, %c0_12] : memref<16x128xf32, #tpu.memory_space<vmem>>, vector<16x128xf32>
      tpu.vector_store %arg6[%c0_11, %c0_12], %13 {strides = array<i32>} : memref<16x128xf32, #tpu.memory_space<vmem>>, vector<16x128xf32>,
    } else {
    }
    %c0 = arith.constant 0 : index
    %c0_1 = arith.constant 0 : index
    %3 = vector.load %arg6[%c0, %c0_1] : memref<16x128xf32, #tpu.memory_space<vmem>>, vector<16x128xf32>
    %c0_2 = arith.constant 0 : index
    %c0_3 = arith.constant 0 : index
    %4 = vector.load %arg3[%c0_2, %c0_3] : memref<16x32xf32, #tpu.memory_space<vmem>>, vector<16x32xf32>
    %5 = arith.truncf %4 : vector<16x32xf32> to vector<16x32xbf16>
    %c0_4 = arith.constant 0 : index
    %c0_5 = arith.constant 0 : index
    %6 = vector.load %arg4[%c0_4, %c0_5] : memref<32x128xbf16, #tpu.memory_space<vmem>>, vector<32x128xbf16>
    %cst = arith.constant dense<0.000000e+00> : vector<16x128xf32>
    %7 = tpu.matmul %5, %6, %cst {dimension_numbers = #tpu.dot_dimension_numbers<[1], [0], [0], [1], [0, 0, 1, 1], [], []>} : vector<16x32xbf16>, vector<32x128xbf16>, vector<16x128xf32> -> vector<16x128xf32>
    %8 = arith.addf %3, %7 : vector<16x128xf32>
    %c0_6 = arith.constant 0 : index
    %c0_7 = arith.constant 0 : index
    %9 = vector.load %arg6[%c0_6, %c0_7] : memref<16x128xf32, #tpu.memory_space<vmem>>, vector<16x128xf32>
    tpu.vector_store %arg6[%c0_6, %c0_7], %8 {strides = array<i32>} : memref<16x128xf32, #tpu.memory_space<vmem>>, vector<16x128xf32>,
    %c0_i32_8 = arith.constant 0 : i32
    %10 = arith.cmpi eq, %arg2, %c0_i32_8 : i32
    %11 = arith.extui %10 : i1 to i32
    %c0_i32_9 = arith.constant 0 : i32
    %12 = arith.cmpi ne, %11, %c0_i32_9 : i32
    scf.if %12 {
      %c0_10 = arith.constant 0 : index
      %c0_11 = arith.constant 0 : index
      %13 = vector.load %arg6[%c0_10, %c0_11] : memref<16x128xf32, #tpu.memory_space<vmem>>, vector<16x128xf32>
      %14 = arith.truncf %13 : vector<16x128xf32> to vector<16x128xbf16>
      %c0_12 = arith.constant 0 : index
      %c0_13 = arith.constant 0 : index
      %15 = vector.load %arg5[%c0_12, %c0_13] : memref<16x128xbf16, #tpu.memory_space<vmem>>, vector<16x128xbf16>
      tpu.vector_store %arg5[%c0_12, %c0_13], %14 {strides = array<i32>} : memref<16x128xbf16, #tpu.memory_space<vmem>>, vector<16x128xbf16>,
    } else {
    }
    return
  }
  func.func @transform_0(%arg0: i32, %arg1: i32, %arg2: i32) -> (i32, i32) {
    %c0_i32 = arith.constant 0 : i32
    return %arg0, %arg2 : i32, i32
  }
  func.func @transform_1(%arg0: i32, %arg1: i32, %arg2: i32) -> (i32, i32) {
    %c0_i32 = arith.constant 0 : i32
    return %arg2, %arg1 : i32, i32
  }
  func.func @transform_2(%arg0: i32, %arg1: i32, %arg2: i32) -> (i32, i32) {
    %c0_i32 = arith.constant 0 : i32
    return %arg0, %arg1 : i32, i32
  }
}

</mosaic_0001>

<bundles_post_ra>
// kernel: tpu_custom_call.1
= control target key start
LH: loop header
LB: loop body
LE: loop exit
PB: predicated region body
PF: predicated region fallthrough
CT: control target
= control target key end

     0   :  { %7 = vsyncpa [#allocation4], 0  ;;  %s255_s0 = inlined_call_operand.hbm [shape: f32[16,32], index: 0, kind: input, shape index: {}]   ;;  %s256_s1 = inlined_call_operand.hbm [shape: bf16[32,128], index: 1, kind: input, shape index: {}]   ;;  %s257_s2 = inlined_call_operand.hbm [shape: bf16[16,128], index: 2, kind: output, shape index: {}]  }
   0x1   :  { %8 = vsyncpa [#allocation7], 0 }
   0x2   :  { %9 = vsyncpa [#allocation5], 0  ;;  %s14_s11 = sshll.u32 %s255_s0, 4  ;;  %s224_s12 = smov [#allocation3]   ;;  %s15_s11 = int_to_ptr.hbm [resolvable:$true] %s14_s11 }
   0x3   :  { %s16_s13 = sshll.u32 %s224_s12, 4  ;;  %s27_s16 = sshll.u32 %s256_s1, 4  ;;  %s17_s13 = int_to_ptr.vmem [resolvable:$true] %s16_s13  ;;  %s28_s16 = int_to_ptr.hbm [resolvable:$true] %s27_s16 }
   0x4   :  { %s225_s17 = smov 128   ;;  %s226_s18 = smov 8  }
   0x5   :  { %22 = dma.hbm_to_vmem [thread:$0]  %s15_s11, 256, %s17_s13, [#allocation4], %s225_s17, %s225_s17, %s226_s18  }
   0x6   :  { %s227_s19 = smov [#allocation6]   ;;  %s228_s21 = smov 64  }
   0x7   :  { %s29_s20 = sshll.u32 %s227_s19, 4  ;;  %s229_s22 = smov 4   ;;  %s30_s20 = int_to_ptr.vmem [resolvable:$true] %s29_s20 }
   0x8   :  { %35 = dma.hbm_to_vmem [thread:$0]  %s28_s16, 256, %s30_s20, [#allocation7], %s228_s21, %s228_s21, %s229_s22  }
   0x9   :  { %218 = dma.done.wait [#allocation4], 256  }
   0xa   :  { %219 = vsyncadd [#allocation4], 4294967040 }
   0xb   :  { %220 = dma.done.wait [#allocation7], 256  }
   0xc   :  { %221 = vsyncadd [#allocation7], 4294967040  ;;  %v133_v0 = vld [vmem:[#allocation6 + $0x8] sm:$0xff]  ;;  %v132_v1 = vld [vmem:[#allocation6] sm:$0xff]  ;;  %vm72_vm0 = vcmask 261120   ;;  %s230_s0 = smov [#allocation8]  }
   0xd   :  { %82 = vmatpush.bf16.msra.mxu0 %v133_v0  ;;  %v53_v2 = vld [vmem:[#allocation3] sm:$0xff]  ;;  %v54_v3 = vld [vmem:[#allocation3 + $0x8] sm:$0xff]  ;;  %s107_s1 = sshll.u32 %s230_s0, 4  ;;  %s109_s25 = sshll.u32 %s257_s2, 4  ;;  %s108_s1 = int_to_ptr.vmem [resolvable:$true] %s107_s1  ;;  %s110_s25 = int_to_ptr.hbm [resolvable:$true] %s109_s25 }
   0xe   :  { %v55_v4 = vpack.c.bf16 %v54_v3, %v53_v2 }
  0x11   :  { %83 = vmatpush.bf16.msra.mxu0 %v132_v1 }
  0x14   :  { %131 = vmatmul.msk.bf16.vlgmr.msra.gmra.mxu0 %vm72_vm0, %v55_v4 }
  0x91   :  { %v85_v5 = vpop.f32.mrf.mxu0 }
  0x99   :  { %v87_v6 = vpop.f32.mrf.mxu0 }
  0x9a   :  { %v137_v7 = vpack.c.bf16 %v87_v6, %v85_v5 }
  0x9c   :  { %138 = vst [vmem:[#allocation8] sm:$0xff] %v137_v7  }
  0x9d   :  { %115 = dma.vmem_to_hbm [thread:$0]  %s108_s1, 128, %s110_s25, [#allocation5], %s228_s21, %s228_s21, %s229_s22  }
  0x9e   :  { %222 = dma.done.wait [#allocation5], 128  }
  0x9f   :  { %223 = vsyncadd [#allocation5], 4294967168 }
  0xa0   :  { %120 = vsyncpa [#allocation4], 1 }
  0xa1   :  { %121 = vsyncpa [#allocation7], 1 }
  0xa2   :  { %122 = vsyncpa [#allocation5], 1 }

</bundles_post_ra>
